<compile_context>
chip_gen: v6e
topology: v6e:2x2x1
jax: 0.10.0
libtpu: 0.0.40
codegen_flags: <defaults>
</compile_context>

<pallas_src>
import functools

import jax
import jax.numpy as jnp
from jax.experimental import pallas as pl
from jax.experimental.pallas import tpu as pltpu

_NEG_BIG = -1e30  # finite "minus infinity" for the online softmax


def _round_up(a, m):
    return (a + m - 1) // m * m


def _cdiv(a, b):
    return (a + b - 1) // b


def _vmem_capacity_bytes():
    """Generation-aware VMEM capacity; conservative 64 MiB (v7x) fallback."""
    try:
        cap = int(getattr(pltpu.get_tpu_info(), "vmem_capacity_bytes", 0))
        if cap > 0:
            return cap
    except Exception:
        pass
    return 64 << 20


def _mixpool_kernel(x_ref, mask_ref, w_ref, b_ref,
                    omax_ref, omin_ref, oavg_ref, oattn_ref,
                    m_ref, l_ref, n_ref,
                    *, seq_len, block_s, s_padded):
    # x_ref:    (TB, TS, H)  VMEM     mask_ref: (TB, TS) VMEM (lane-dense)
    # w_ref:    (1, H)       VMEM     b_ref:    (1, 1)   SMEM scalar
    # o*_ref:   (TB, H)      VMEM outputs, resident across the S-chunk axis
    # m/l/n:    (TB, 1)      VMEM scratch (running max / denom / valid count)
    s_idx = pl.program_id(1)
    neg_big = jnp.float32(_NEG_BIG)

    @pl.when(s_idx == 0)
    def _init():
        omax_ref[...] = jnp.full(omax_ref.shape, -jnp.inf, jnp.float32)
        omin_ref[...] = jnp.full(omin_ref.shape, jnp.inf, jnp.float32)
        oavg_ref[...] = jnp.zeros(oavg_ref.shape, jnp.float32)
        oattn_ref[...] = jnp.zeros(oattn_ref.shape, jnp.float32)
        m_ref[...] = jnp.full(m_ref.shape, neg_big, jnp.float32)
        l_ref[...] = jnp.zeros(l_ref.shape, jnp.float32)
        n_ref[...] = jnp.zeros(n_ref.shape, jnp.float32)

    x = x_ref[...].astype(jnp.float32)        # (TB, TS, H)
    mask = mask_ref[...]                      # (TB, TS), 0 = drop / padding

    # ---- max / min / sum pooling over this S chunk (mask-agnostic) --------
    if s_padded:
        # Only the last chunk can hold padded positions; exclude them from the
        # max/min reductions.  Padded x is 0, so the sum needs no masking.
        pos = s_idx * block_s + jax.lax.broadcasted_iota(
            jnp.int32, (1, block_s), 1)
        valid = (pos < seq_len)[:, :, None]                   # (1, TS, 1)
        x_for_max = jnp.where(valid, x, jnp.float32(-jnp.inf))
        x_for_min = jnp.where(valid, x, jnp.float32(jnp.inf))
    else:
        x_for_max = x
        x_for_min = x

    omax_ref[...] = jnp.maximum(omax_ref[...], jnp.max(x_for_max, axis=1))
    omin_ref[...] = jnp.minimum(omin_ref[...], jnp.min(x_for_min, axis=1))
    oavg_ref[...] = oavg_ref[...] + jnp.sum(x, axis=1)

    # ---- Linear(H, 1) score on the VPU/XLU (lane reduce, lane-dense) ------
    w = w_ref[...][None, :, :]                                # (1, 1, H)
    score = jnp.sum(x * w, axis=-1) + b_ref[0, 0]             # (TB, TS)
    # masked_fill(mask == 0, -inf): finite stand-in so exp underflows to 0.
    score = jnp.where(mask == 0.0, neg_big, score)

    # ---- online softmax accumulation over S chunks -------------------------
    m_prev = m_ref[...]                                       # (TB, 1)
    m_new = jnp.maximum(m_prev, jnp.max(score, axis=1, keepdims=True))
    alpha = jnp.exp(m_prev - m_new)                           # (TB, 1)
    p = jnp.exp(score - m_new)                                # (TB, TS)
    l_ref[...] = alpha * l_ref[...] + jnp.sum(p, axis=1, keepdims=True)
    oattn_ref[...] = (alpha * oattn_ref[...]
                      + jnp.sum(p[:, :, None] * x, axis=1))
    m_ref[...] = m_new
    n_ref[...] = n_ref[...] + jnp.sum(
        jnp.where(mask == 0.0, 0.0, 1.0), axis=1, keepdims=True)

    # ---- finalize -----------------------------------------------------------
    @pl.when(s_idx == pl.num_programs(1) - 1)
    def _fin():
        oavg_ref[...] = oavg_ref[...] * jnp.float32(1.0 / seq_len)
        denom = l_ref[...]                                    # >= 1 always
        inv = pl.reciprocal(denom, approx=True)
        inv = inv * (jnp.float32(2.0) - denom * inv)          # Newton refine
        attn = oattn_ref[...] * inv
        # Rows with no valid token: reference softmax(all -inf) == NaN.
        oattn_ref[...] = jnp.where(n_ref[...] > 0.0, attn,
                                   jnp.float32(jnp.nan))


def mix_pooling(x, mask, weight, bias, *, block_b=None, block_s=None,
                vmem_budget_bytes=None, interpret=False):
    """MixPooling forward.

    x:      (B, S, H) float32 or bfloat16
    mask:   (B, S) float, nonzero = keep
    weight: Linear(H, 1) weight, shape (1, H) (torch layout), (H,) or (H, 1)
    bias:   shape (1,)
    returns (B, 4*H) in x's dtype
    """
    x = jnp.asarray(x)
    if x.dtype not in (jnp.float32, jnp.bfloat16):
        x = x.astype(jnp.float32)
    out_dtype = x.dtype
    B, S, H = x.shape
    mask2 = jnp.asarray(mask, jnp.float32).reshape(B, S)
    w_row = jnp.asarray(weight, jnp.float32).reshape(1, H)
    b2 = jnp.asarray(bias, jnp.float32).reshape(1, 1)

    xbytes = jnp.dtype(x.dtype).itemsize
    H_pad = _round_up(H, 128)

    vmem_cap = _vmem_capacity_bytes()
    if vmem_budget_bytes is None:
        vmem_budget_bytes = int(vmem_cap * 0.6)

    def step_bytes(bb, bs):
        # Padded VMEM footprint per grid step (double-buffered in/out).
        bb8 = _round_up(bb, 8)
        x_b = 2 * bb * _round_up(bs, 8) * H_pad * xbytes
        m_b = 2 * bb8 * _round_up(bs, 128) * 4
        o_b = 2 * 4 * bb8 * H_pad * 4
        w_b = 8 * H_pad * 4
        s_b = 3 * bb8 * 128 * 4
        return x_b + m_b + o_b + w_b + s_b

    # ---- choose the S chunk (full S if it fits; else multiples of 128) -----
    bb_min = B if B < 8 else 8
    if block_s is None:
        if step_bytes(bb_min, S) <= vmem_budget_bytes:
            block_s = S
        else:
            bs = max(128, (S // 128) * 128)
            while bs > 128 and step_bytes(bb_min, bs) > vmem_budget_bytes:
                bs -= 128
            block_s = bs
    if block_s >= S:
        block_s = S
    elif block_s % 128:
        block_s = max(128, (block_s // 128) * 128)

    S_arr = S if block_s == S else _round_up(S, block_s)
    ns = S_arr // block_s
    s_padded = S_arr != S

    # ---- choose the batch block: multiple of 8 (or B itself when B < 8) ----
    if B < 8:
        bb = B
    elif block_b is not None:
        bb = min(max(8, (int(block_b) // 8) * 8), _round_up(B, 8))
    else:
        cands = []
        cand, limit = 8, _round_up(B, 8)
        while cand <= limit:
            if step_bytes(cand, block_s) <= vmem_budget_bytes:
                nb_c = _cdiv(B, cand)
                pad_c = nb_c * cand - B
                bad = 0 if (nb_c >= 2 and nb_c % 2 == 0) else 1  # v7x megacore
                cands.append((bad, pad_c, nb_c, -cand, cand))
            cand += 8
        bb = sorted(cands)[0][-1] if cands else 8
    nb = _cdiv(B, bb)
    B_pad = nb * bb

    # ---- pad inputs (zeros; padded rows/positions are masked / sliced off) -
    if B_pad != B or S_arr != S:
        x = jnp.pad(x, ((0, B_pad - B), (0, S_arr - S), (0, 0)))
        mask2 = jnp.pad(mask2, ((0, B_pad - B), (0, S_arr - S)))

    vmem_needed = step_bytes(bb, block_s)
    vmem_limit = int(min(max(int(vmem_needed * 1.25) + (2 << 20), 32 << 20),
                         int(vmem_cap * 0.9)))

    kernel = functools.partial(_mixpool_kernel, seq_len=S, block_s=block_s,
                               s_padded=s_padded)

    cost = pl.CostEstimate(
        flops=int(7 * B_pad * S_arr * H),
        transcendentals=int(B_pad * S_arr),
        bytes_accessed=int(B_pad * S_arr * H * xbytes + B_pad * S_arr * 4
                           + 4 * B_pad * H * 4 + H * 4 + 4),
    )

    out_sds = jax.ShapeDtypeStruct((B_pad, H), jnp.float32)
    out_specs = [pl.BlockSpec((bb, H), lambda b, s: (b, 0)) for _ in range(4)]

    x_max, x_min, x_avg, x_attn = pl.pallas_call(
        kernel,
        out_shape=(out_sds, out_sds, out_sds, out_sds),
        grid_spec=pltpu.PrefetchScalarGridSpec(
            num_scalar_prefetch=0,
            grid=(nb, ns),
            in_specs=[
                pl.BlockSpec((bb, block_s, H), lambda b, s: (b, s, 0)),
                pl.BlockSpec((bb, block_s), lambda b, s: (b, s)),
                pl.BlockSpec((1, H), lambda b, s: (0, 0)),
                pl.BlockSpec(memory_space=pltpu.MemorySpace.SMEM),
            ],
            out_specs=out_specs,
            scratch_shapes=[pltpu.VMEM((bb, 1), jnp.float32)] * 3,
        ),
        compiler_params=pltpu.CompilerParams(
            dimension_semantics=("parallel", "arbitrary"),
            vmem_limit_bytes=vmem_limit,
        ),
        cost_estimate=cost,
        interpret=interpret,
    )(x, mask2, w_row, b2)

    out = jnp.concatenate(
        (x_max[:B], x_min[:B], x_avg[:B], x_attn[:B]), axis=-1)
    return out.astype(out_dtype)


def mix_pooling_ref(x, mask, weight, bias):
    """Pure-JAX reference matching the PyTorch forward (weight in (1, H))."""
    x = jnp.asarray(x, jnp.float32)
    x_max = jnp.max(x, axis=1)
    x_min = jnp.min(x, axis=1)
    x_avg = jnp.mean(x, axis=1)
    score = jnp.einsum("bsh,oh->bso", x, weight) + bias            # (B, S, 1)
    score = jnp.where(mask[..., None] == 0, -jnp.inf, score)
    attention = jax.nn.softmax(score, axis=1)
    x_attn = jnp.sum(attention * x, axis=1)
    return jnp.concatenate((x_max, x_min, x_avg, x_attn), axis=-1)


if __name__ == "__main__":
    key = jax.random.PRNGKey(0)
    kx, kw, kb, km = jax.random.split(key, 4)

    # ---- main small-shape demo: single S chunk, 2 even batch grid steps ----
    B, S, H = 16, 8, 32
    x = jax.random.normal(kx, (B, S, H), dtype=jnp.float32)
    weight = jax.random.normal(kw, (1, H), dtype=jnp.float32) * 0.1
    bias = jax.random.normal(kb, (1,), dtype=jnp.float32) * 0.1
    # Mask: 1 = valid token, 0 = padding (>=1 valid per row, else NaN like torch).
    mask = (jax.random.uniform(km, (B, S)) > 0.3).astype(jnp.float32)
    mask = mask.at[:, 0].set(1.0)

    out = jax.block_until_ready(mix_pooling(x, mask, weight, bias))
    ref = mix_pooling_ref(x, mask, weight, bias)
    assert out.shape == (B, 4 * H)
    assert jnp.allclose(out, ref, atol=1e-4, rtol=1e-4), "mismatch (main path)"

    # ---- exercise the S-chunked online-softmax path (with S & B padding) ---
    B2, S2, H2 = 12, 200, 32
    k2 = jax.random.split(key, 8)
    x2 = jax.random.normal(k2[4], (B2, S2, H2), dtype=jnp.float32)
    w2 = jax.random.normal(k2[5], (1, H2), dtype=jnp.float32) * 0.1
    b2 = jax.random.normal(k2[6], (1,), dtype=jnp.float32) * 0.1
    m2 = (jax.random.uniform(k2[7], (B2, S2)) > 0.3).astype(jnp.float32)
    m2 = m2.at[:, 0].set(1.0)

    out2 = jax.block_until_ready(mix_pooling(x2, m2, w2, b2, block_s=128))
    ref2 = mix_pooling_ref(x2, m2, w2, b2)
    assert out2.shape == (B2, 4 * H2)
    assert jnp.allclose(out2, ref2, atol=2e-4, rtol=2e-4), "mismatch (chunked)"

    print("KERNEL_OK")
</pallas_src>

<mosaic_0001>
module attributes {stable_mosaic.version = 11 : i64} {
  func.func @_mixpool_kernel(%arg0: i32, %arg1: i32, %arg2: memref<8x8x32xf32, #tpu.memory_space<vmem>>, %arg3: memref<8x8xf32, #tpu.memory_space<vmem>>, %arg4: memref<1x32xf32, #tpu.memory_space<vmem>>, %arg5: memref<1x1xf32, #tpu.memory_space<smem>>, %arg6: memref<8x32xf32, #tpu.memory_space<vmem>>, %arg7: memref<8x32xf32, #tpu.memory_space<vmem>>, %arg8: memref<8x32xf32, #tpu.memory_space<vmem>>, %arg9: memref<8x32xf32, #tpu.memory_space<vmem>>, %arg10: memref<8x1xf32, #tpu.memory_space<vmem>>, %arg11: memref<8x1xf32, #tpu.memory_space<vmem>>, %arg12: memref<8x1xf32, #tpu.memory_space<vmem>>) attributes {dimension_semantics = [#tpu.dimension_semantics<parallel>, #tpu.dimension_semantics<arbitrary>], iteration_bounds = array<i64: 2, 1>, scalar_prefetch = 0 : i64, scratch_operands = 3 : i64, tpu.core_type = #tpu.core_type<tc>, window_params = [{transform_indices = @transform_0, window_bounds = array<i64: 8, 8, 32>}, {transform_indices = @transform_1, window_bounds = array<i64: 8, 8>}, {pipeline_mode = #tpu.pipeline_mode<synchronous>, transform_indices = @transform_2, window_bounds = array<i64: 1, 32>}, {transform_indices = @transform_3, window_bounds = array<i64: 1, 1>}, {transform_indices = @transform_4, window_bounds = array<i64: 8, 32>}, {transform_indices = @transform_5, window_bounds = array<i64: 8, 32>}, {transform_indices = @transform_6, window_bounds = array<i64: 8, 32>}, {transform_indices = @transform_7, window_bounds = array<i64: 8, 32>}]} {
    %c0_i32 = arith.constant 0 : i32
    %0 = arith.cmpi eq, %arg1, %c0_i32 : i32
    %1 = arith.extui %0 : i1 to i32
    %cst = arith.constant -1.000000e+30 : f32
    %c0_i32_0 = arith.constant 0 : i32
    %2 = arith.cmpi ne, %1, %c0_i32_0 : i32
    scf.if %2 {
      %cst_52 = arith.constant 0xFF800000 : f32
      %67 = vector.broadcast %cst_52 : f32 to vector<8x32xf32>
      %c0_53 = arith.constant 0 : index
      %c0_54 = arith.constant 0 : index
      %68 = vector.load %arg6[%c0_53, %c0_54] : memref<8x32xf32, #tpu.memory_space<vmem>>, vector<8x32xf32>
      tpu.vector_store %arg6[%c0_53, %c0_54], %67 {strides = array<i32>} : memref<8x32xf32, #tpu.memory_space<vmem>>, vector<8x32xf32>,
      %cst_55 = arith.constant 0x7F800000 : f32
      %69 = vector.broadcast %cst_55 : f32 to vector<8x32xf32>
      %c0_56 = arith.constant 0 : index
      %c0_57 = arith.constant 0 : index
      %70 = vector.load %arg7[%c0_56, %c0_57] : memref<8x32xf32, #tpu.memory_space<vmem>>, vector<8x32xf32>
      tpu.vector_store %arg7[%c0_56, %c0_57], %69 {strides = array<i32>} : memref<8x32xf32, #tpu.memory_space<vmem>>, vector<8x32xf32>,
      %cst_58 = arith.constant 0.000000e+00 : f32
      %71 = vector.broadcast %cst_58 : f32 to vector<8x32xf32>
      %c0_59 = arith.constant 0 : index
      %c0_60 = arith.constant 0 : index
      %72 = vector.load %arg8[%c0_59, %c0_60] : memref<8x32xf32, #tpu.memory_space<vmem>>, vector<8x32xf32>
      tpu.vector_store %arg8[%c0_59, %c0_60], %71 {strides = array<i32>} : memref<8x32xf32, #tpu.memory_space<vmem>>, vector<8x32xf32>,
      %cst_61 = arith.constant 0.000000e+00 : f32
      %73 = vector.broadcast %cst_61 : f32 to vector<8x32xf32>
      %c0_62 = arith.constant 0 : index
      %c0_63 = arith.constant 0 : index
      %74 = vector.load %arg9[%c0_62, %c0_63] : memref<8x32xf32, #tpu.memory_space<vmem>>, vector<8x32xf32>
      tpu.vector_store %arg9[%c0_62, %c0_63], %73 {strides = array<i32>} : memref<8x32xf32, #tpu.memory_space<vmem>>, vector<8x32xf32>,
      %75 = vector.broadcast %cst : f32 to vector<8x1xf32>
      %c0_64 = arith.constant 0 : index
      %c0_65 = arith.constant 0 : index
      %76 = vector.load %arg10[%c0_64, %c0_65] : memref<8x1xf32, #tpu.memory_space<vmem>>, vector<8x1xf32>
      tpu.vector_store %arg10[%c0_64, %c0_65], %75 {strides = array<i32>} : memref<8x1xf32, #tpu.memory_space<vmem>>, vector<8x1xf32>,
      %cst_66 = arith.constant 0.000000e+00 : f32
      %77 = vector.broadcast %cst_66 : f32 to vector<8x1xf32>
      %c0_67 = arith.constant 0 : index
      %c0_68 = arith.constant 0 : index
      %78 = vector.load %arg11[%c0_67, %c0_68] : memref<8x1xf32, #tpu.memory_space<vmem>>, vector<8x1xf32>
      tpu.vector_store %arg11[%c0_67, %c0_68], %77 {strides = array<i32>} : memref<8x1xf32, #tpu.memory_space<vmem>>, vector<8x1xf32>,
      %cst_69 = arith.constant 0.000000e+00 : f32
      %79 = vector.broadcast %cst_69 : f32 to vector<8x1xf32>
      %c0_70 = arith.constant 0 : index
      %c0_71 = arith.constant 0 : index
      %80 = vector.load %arg12[%c0_70, %c0_71] : memref<8x1xf32, #tpu.memory_space<vmem>>, vector<8x1xf32>
      tpu.vector_store %arg12[%c0_70, %c0_71], %79 {strides = array<i32>} : memref<8x1xf32, #tpu.memory_space<vmem>>, vector<8x1xf32>,
    } else {
    }
    %c0 = arith.constant 0 : index
    %c0_1 = arith.constant 0 : index
    %c0_2 = arith.constant 0 : index
    %3 = vector.load %arg2[%c0, %c0_1, %c0_2] : memref<8x8x32xf32, #tpu.memory_space<vmem>>, vector<8x8x32xf32>
    %c0_3 = arith.constant 0 : index
    %c0_4 = arith.constant 0 : index
    %4 = vector.load %arg3[%c0_3, %c0_4] : memref<8x8xf32, #tpu.memory_space<vmem>>, vector<8x8xf32>
    %c0_5 = arith.constant 0 : index
    %c0_6 = arith.constant 0 : index
    %5 = vector.load %arg6[%c0_5, %c0_6] : memref<8x32xf32, #tpu.memory_space<vmem>>, vector<8x32xf32>
    %cst_7 = arith.constant dense<0xFF800000> : vector<8x32xf32>
    %6 = vector.multi_reduction <maximumf>, %3, %cst_7 [1] : vector<8x8x32xf32> to vector<8x32xf32>
    %7 = arith.maximumf %5, %6 : vector<8x32xf32>
    %c0_8 = arith.constant 0 : index
    %c0_9 = arith.constant 0 : index
    %8 = vector.load %arg6[%c0_8, %c0_9] : memref<8x32xf32, #tpu.memory_space<vmem>>, vector<8x32xf32>
    tpu.vector_store %arg6[%c0_8, %c0_9], %7 {strides = array<i32>} : memref<8x32xf32, #tpu.memory_space<vmem>>, vector<8x32xf32>,
    %c0_10 = arith.constant 0 : index
    %c0_11 = arith.constant 0 : index
    %9 = vector.load %arg7[%c0_10, %c0_11] : memref<8x32xf32, #tpu.memory_space<vmem>>, vector<8x32xf32>
    %cst_12 = arith.constant dense<0x7F800000> : vector<8x32xf32>
    %10 = vector.multi_reduction <minimumf>, %3, %cst_12 [1] : vector<8x8x32xf32> to vector<8x32xf32>
    %11 = arith.minimumf %9, %10 : vector<8x32xf32>
    %c0_13 = arith.constant 0 : index
    %c0_14 = arith.constant 0 : index
    %12 = vector.load %arg7[%c0_13, %c0_14] : memref<8x32xf32, #tpu.memory_space<vmem>>, vector<8x32xf32>
    tpu.vector_store %arg7[%c0_13, %c0_14], %11 {strides = array<i32>} : memref<8x32xf32, #tpu.memory_space<vmem>>, vector<8x32xf32>,
    %c0_15 = arith.constant 0 : index
    %c0_16 = arith.constant 0 : index
    %13 = vector.load %arg8[%c0_15, %c0_16] : memref<8x32xf32, #tpu.memory_space<vmem>>, vector<8x32xf32>
    %cst_17 = arith.constant dense<0.000000e+00> : vector<8x32xf32>
    %14 = vector.multi_reduction <add>, %3, %cst_17 [1] : vector<8x8x32xf32> to vector<8x32xf32>
    %15 = arith.addf %13, %14 : vector<8x32xf32>
    %c0_18 = arith.constant 0 : index
    %c0_19 = arith.constant 0 : index
    %16 = vector.load %arg8[%c0_18, %c0_19] : memref<8x32xf32, #tpu.memory_space<vmem>>, vector<8x32xf32>
    tpu.vector_store %arg8[%c0_18, %c0_19], %15 {strides = array<i32>} : memref<8x32xf32, #tpu.memory_space<vmem>>, vector<8x32xf32>,
    %c0_20 = arith.constant 0 : index
    %c0_21 = arith.constant 0 : index
    %17 = vector.load %arg4[%c0_20, %c0_21] : memref<1x32xf32, #tpu.memory_space<vmem>>, vector<1x32xf32>
    %18 = vector.shape_cast %17 : vector<1x32xf32> to vector<1x1x32xf32>
    %19 = vector.broadcast %18 : vector<1x1x32xf32> to vector<8x8x32xf32>
    %20 = arith.mulf %3, %19 : vector<8x8x32xf32>
    %cst_22 = arith.constant dense<0.000000e+00> : vector<8x8xf32>
    %21 = vector.multi_reduction <add>, %20, %cst_22 [2] : vector<8x8x32xf32> to vector<8x8xf32>
    %c0_23 = arith.constant 0 : index
    %c0_24 = arith.constant 0 : index
    %22 = memref.load %arg5[%c0_23, %c0_24] : memref<1x1xf32, #tpu.memory_space<smem>>
    %23 = vector.broadcast %22 : f32 to vector<8x8xf32>
    %24 = arith.addf %21, %23 : vector<8x8xf32>
    %cst_25 = arith.constant 0.000000e+00 : f32
    %25 = vector.broadcast %cst_25 : f32 to vector<8x8xf32>
    %26 = arith.cmpf oeq, %4, %25 : vector<8x8xf32>
    %cst_26 = arith.constant -1.000000e+30 : f32
    %27 = vector.broadcast %cst_26 : f32 to vector<8x8xf32>
    %28 = arith.select %26, %27, %24 : vector<8x8xi1>, vector<8x8xf32>
    %c0_27 = arith.constant 0 : index
    %c0_28 = arith.constant 0 : index
    %29 = vector.load %arg10[%c0_27, %c0_28] : memref<8x1xf32, #tpu.memory_space<vmem>>, vector<8x1xf32>
    %cst_29 = arith.constant dense<0xFF800000> : vector<8xf32>
    %30 = vector.multi_reduction <maximumf>, %28, %cst_29 [1] : vector<8x8xf32> to vector<8xf32>
    %31 = vector.shape_cast %30 : vector<8xf32> to vector<8x1xf32>
    %32 = arith.maximumf %29, %31 : vector<8x1xf32>
    %33 = arith.subf %29, %32 : vector<8x1xf32>
    %34 = math.exp %33 : vector<8x1xf32>
    %35 = vector.broadcast %32 : vector<8x1xf32> to vector<8x8xf32>
    %36 = arith.subf %28, %35 : vector<8x8xf32>
    %37 = math.exp %36 : vector<8x8xf32>
    %c0_30 = arith.constant 0 : index
    %c0_31 = arith.constant 0 : index
    %38 = vector.load %arg11[%c0_30, %c0_31] : memref<8x1xf32, #tpu.memory_space<vmem>>, vector<8x1xf32>
    %39 = arith.mulf %34, %38 : vector<8x1xf32>
    %cst_32 = arith.constant dense<0.000000e+00> : vector<8xf32>
    %40 = vector.multi_reduction <add>, %37, %cst_32 [1] : vector<8x8xf32> to vector<8xf32>
    %41 = vector.shape_cast %40 : vector<8xf32> to vector<8x1xf32>
    %42 = arith.addf %39, %41 : vector<8x1xf32>
    %c0_33 = arith.constant 0 : index
    %c0_34 = arith.constant 0 : index
    %43 = vector.load %arg11[%c0_33, %c0_34] : memref<8x1xf32, #tpu.memory_space<vmem>>, vector<8x1xf32>
    tpu.vector_store %arg11[%c0_33, %c0_34], %42 {strides = array<i32>} : memref<8x1xf32, #tpu.memory_space<vmem>>, vector<8x1xf32>,
    %c0_35 = arith.constant 0 : index
    %c0_36 = arith.constant 0 : index
    %44 = vector.load %arg9[%c0_35, %c0_36] : memref<8x32xf32, #tpu.memory_space<vmem>>, vector<8x32xf32>
    %45 = vector.broadcast %34 : vector<8x1xf32> to vector<8x32xf32>
    %46 = arith.mulf %45, %44 : vector<8x32xf32>
    %47 = vector.shape_cast %37 : vector<8x8xf32> to vector<8x8x1xf32>
    %48 = vector.broadcast %47 : vector<8x8x1xf32> to vector<8x8x32xf32>
    %49 = arith.mulf %48, %3 : vector<8x8x32xf32>
    %cst_37 = arith.constant dense<0.000000e+00> : vector<8x32xf32>
    %50 = vector.multi_reduction <add>, %49, %cst_37 [1] : vector<8x8x32xf32> to vector<8x32xf32>
    %51 = arith.addf %46, %50 : vector<8x32xf32>
    %c0_38 = arith.constant 0 : index
    %c0_39 = arith.constant 0 : index
    %52 = vector.load %arg9[%c0_38, %c0_39] : memref<8x32xf32, #tpu.memory_space<vmem>>, vector<8x32xf32>
    tpu.vector_store %arg9[%c0_38, %c0_39], %51 {strides = array<i32>} : memref<8x32xf32, #tpu.memory_space<vmem>>, vector<8x32xf32>,
    %c0_40 = arith.constant 0 : index
    %c0_41 = arith.constant 0 : index
    %53 = vector.load %arg10[%c0_40, %c0_41] : memref<8x1xf32, #tpu.memory_space<vmem>>, vector<8x1xf32>
    tpu.vector_store %arg10[%c0_40, %c0_41], %32 {strides = array<i32>} : memref<8x1xf32, #tpu.memory_space<vmem>>, vector<8x1xf32>,
    %c0_42 = arith.constant 0 : index
    %c0_43 = arith.constant 0 : index
    %54 = vector.load %arg12[%c0_42, %c0_43] : memref<8x1xf32, #tpu.memory_space<vmem>>, vector<8x1xf32>
    %cst_44 = arith.constant 0.000000e+00 : f32
    %55 = vector.broadcast %cst_44 : f32 to vector<8x8xf32>
    %56 = arith.cmpf oeq, %4, %55 : vector<8x8xf32>
    %cst_45 = arith.constant 0.000000e+00 : f32
    %cst_46 = arith.constant 1.000000e+00 : f32
    %57 = vector.broadcast %cst_45 : f32 to vector<8x8xf32>
    %58 = vector.broadcast %cst_46 : f32 to vector<8x8xf32>
    %59 = arith.select %56, %57, %58 : vector<8x8xi1>, vector<8x8xf32>
    %cst_47 = arith.constant dense<0.000000e+00> : vector<8xf32>
    %60 = vector.multi_reduction <add>, %59, %cst_47 [1] : vector<8x8xf32> to vector<8xf32>
    %61 = vector.shape_cast %60 : vector<8xf32> to vector<8x1xf32>
    %62 = arith.addf %54, %61 : vector<8x1xf32>
    %c0_48 = arith.constant 0 : index
    %c0_49 = arith.constant 0 : index
    %63 = vector.load %arg12[%c0_48, %c0_49] : memref<8x1xf32, #tpu.memory_space<vmem>>, vector<8x1xf32>
    tpu.vector_store %arg12[%c0_48, %c0_49], %62 {strides = array<i32>} : memref<8x1xf32, #tpu.memory_space<vmem>>, vector<8x1xf32>,
    %c0_i32_50 = arith.constant 0 : i32
    %64 = arith.cmpi eq, %arg1, %c0_i32_50 : i32
    %65 = arith.extui %64 : i1 to i32
    %c0_i32_51 = arith.constant 0 : i32
    %66 = arith.cmpi ne, %65, %c0_i32_51 : i32
    scf.if %66 {
      %c0_52 = arith.constant 0 : index
      %c0_53 = arith.constant 0 : index
      %67 = vector.load %arg8[%c0_52, %c0_53] : memref<8x32xf32, #tpu.memory_space<vmem>>, vector<8x32xf32>
      %cst_54 = arith.constant 1.250000e-01 : f32
      %68 = vector.broadcast %cst_54 : f32 to vector<8x32xf32>
      %69 = arith.mulf %67, %68 : vector<8x32xf32>
      %c0_55 = arith.constant 0 : index
      %c0_56 = arith.constant 0 : index
      %70 = vector.load %arg8[%c0_55, %c0_56] : memref<8x32xf32, #tpu.memory_space<vmem>>, vector<8x32xf32>
      tpu.vector_store %arg8[%c0_55, %c0_56], %69 {strides = array<i32>} : memref<8x32xf32, #tpu.memory_space<vmem>>, vector<8x32xf32>,
      %c0_57 = arith.constant 0 : index
      %c0_58 = arith.constant 0 : index
      %71 = vector.load %arg11[%c0_57, %c0_58] : memref<8x1xf32, #tpu.memory_space<vmem>>, vector<8x1xf32>
      %72 = tpu.reciprocal %71 {approx = true} : vector<8x1xf32> -> vector<8x1xf32>
      %73 = arith.mulf %71, %72 : vector<8x1xf32>
      %cst_59 = arith.constant 2.000000e+00 : f32
      %74 = vector.broadcast %cst_59 : f32 to vector<8x1xf32>
      %75 = arith.subf %74, %73 : vector<8x1xf32>
      %76 = arith.mulf %72, %75 : vector<8x1xf32>
      %c0_60 = arith.constant 0 : index
      %c0_61 = arith.constant 0 : index
      %77 = vector.load %arg9[%c0_60, %c0_61] : memref<8x32xf32, #tpu.memory_space<vmem>>, vector<8x32xf32>
      %78 = vector.broadcast %76 : vector<8x1xf32> to vector<8x32xf32>
      %79 = arith.mulf %77, %78 : vector<8x32xf32>
      %c0_62 = arith.constant 0 : index
      %c0_63 = arith.constant 0 : index
      %80 = vector.load %arg12[%c0_62, %c0_63] : memref<8x1xf32, #tpu.memory_space<vmem>>, vector<8x1xf32>
      %cst_64 = arith.constant 0.000000e+00 : f32
      %81 = vector.broadcast %cst_64 : f32 to vector<8x1xf32>
      %82 = arith.cmpf ogt, %80, %81 : vector<8x1xf32>
      %cst_65 = arith.constant 0x7FC00000 : f32
      %83 = vector.shape_cast %82 : vector<8x1xi1> to vector<8x1xi1>
      %84 = vector.broadcast %83 : vector<8x1xi1> to vector<8x32xi1>
      %85 = vector.broadcast %cst_65 : f32 to vector<8x32xf32>
      %86 = arith.select %84, %79, %85 : vector<8x32xi1>, vector<8x32xf32>
      %c0_66 = arith.constant 0 : index
      %c0_67 = arith.constant 0 : index
      %87 = vector.load %arg9[%c0_66, %c0_67] : memref<8x32xf32, #tpu.memory_space<vmem>>, vector<8x32xf32>
      tpu.vector_store %arg9[%c0_66, %c0_67], %86 {strides = array<i32>} : memref<8x32xf32, #tpu.memory_space<vmem>>, vector<8x32xf32>,
    } else {
    }
    return
  }
  func.func @transform_0(%arg0: i32, %arg1: i32) -> (i32, i32, i32) {
    %c0_i32 = arith.constant 0 : i32
    %c0_i32_0 = arith.constant 0 : i32
    return %arg0, %arg1, %c0_i32 : i32, i32, i32
  }
  func.func @transform_1(%arg0: i32, %arg1: i32) -> (i32, i32) {
    %c0_i32 = arith.constant 0 : i32
    return %arg0, %arg1 : i32, i32
  }
  func.func @transform_2(%arg0: i32, %arg1: i32) -> (i32, i32) {
    %c0_i32 = arith.constant 0 : i32
    %c0_i32_0 = arith.constant 0 : i32
    %c0_i32_1 = arith.constant 0 : i32
    return %c0_i32, %c0_i32_0 : i32, i32
  }
  func.func @transform_3(%arg0: i32, %arg1: i32) -> (i32, i32) {
    %c0_i32 = arith.constant 0 : i32
    %c0_i32_0 = arith.constant 0 : i32
    %c0_i32_1 = arith.constant 0 : i32
    return %c0_i32, %c0_i32_0 : i32, i32
  }
  func.func @transform_4(%arg0: i32, %arg1: i32) -> (i32, i32) {
    %c0_i32 = arith.constant 0 : i32
    %c0_i32_0 = arith.constant 0 : i32
    return %arg0, %c0_i32 : i32, i32
  }
  func.func @transform_5(%arg0: i32, %arg1: i32) -> (i32, i32) {
    %c0_i32 = arith.constant 0 : i32
    %c0_i32_0 = arith.constant 0 : i32
    return %arg0, %c0_i32 : i32, i32
  }
  func.func @transform_6(%arg0: i32, %arg1: i32) -> (i32, i32) {
    %c0_i32 = arith.constant 0 : i32
    %c0_i32_0 = arith.constant 0 : i32
    return %arg0, %c0_i32 : i32, i32
  }
  func.func @transform_7(%arg0: i32, %arg1: i32) -> (i32, i32) {
    %c0_i32 = arith.constant 0 : i32
    %c0_i32_0 = arith.constant 0 : i32
    return %arg0, %c0_i32 : i32, i32
  }
}

</mosaic_0001>

<bundles_post_ra>
// kernel: tpu_custom_call.1
= control target key start
LH: loop header
LB: loop body
LE: loop exit
PB: predicated region body
PF: predicated region fallthrough
CT: control target
= control target key end

     0   :  { %s2046_s0 = inlined_call_operand.hbm [shape: f32[16,8,32], index: 0, kind: input, shape index: {}]   ;;  %s2047_s1 = inlined_call_operand.vmem [shape: f32[16,8], index: 1, kind: input, shape index: {}]   ;;  %s2048_s2 = inlined_call_operand.vmem [shape: f32[1,32], index: 2, kind: input, shape index: {}]   ;;  %s2049_s3 = inlined_call_operand.<no memory space> [shape: f32[1,1], index: 3, kind: input, shape index: {}]   ;;  %s2050_s4 = inlined_call_operand.hbm [shape: f32[16,32], index: 4, kind: output, shape index: {0}]   ;;  %s2051_s5 = inlined_call_operand.hbm [shape: f32[16,32], index: 5, kind: output, shape index: {1}]   ;;  %s2052_s6 = inlined_call_operand.hbm [shape: f32[16,32], index: 6, kind: output, shape index: {2}]   ;;  %s2053_s7 = inlined_call_operand.hbm [shape: f32[16,32], index: 7, kind: output, shape index: {3}]  }
   0x1   :  { %2056 = sst [smem:[#allocation20_spill]] %s2046_s0 }
   0x2   :  { %2057 = sst [smem:[#allocation21_spill]] %s2047_s1 }
   0x3   :  { %2058 = sst [smem:[#allocation22_spill]] %s2048_s2 }
   0x4   :  { %13 = sst [smem:[#allocation5]] %s2049_s3 }
   0x5   :  { %14 = vsyncpa [#allocation7], 0 }
   0x6   :  { %16 = vsyncpa [#allocation7 + $0x1], 0 }
   0x7   :  { %17 = vsyncpa [#allocation8], 0 }
   0x8   :  { %19 = vsyncpa [#allocation8 + $0x1], 0 }
   0x9   :  { %20 = vsyncpa [#allocation11], 0 }
   0xa   :  { %22 = vsyncpa [#allocation11 + $0x1], 0 }
   0xb   :  { %23 = vsyncpa [#allocation14], 0 }
   0xc   :  { %25 = vsyncpa [#allocation14 + $0x1], 0  ;;  %s1558_s26 = smov 0   ;;  %s1560_s27 = smov 0  }
   0xd   :  { %s1562_s28 = smov 0   ;;  %s1564_s29 = smov 0  }
   0xe   :  { %s1566_s30 = smov 0   ;;  %s1568_s8 = smov 0  }
   0xf LB: > { %s1589_s3 = sadd.s32 4294967295, %s1500_s8   ;;  %s2054_s9 = sadd.s32 4294967294, %s1500_s8   ;;  %s1500_s8 = sphi %s1568_s8, %s31_s8   ;;  %s1496_s30 = sphi %s1566_s30, %s2075_s30   ;;  %s1492_s29 = sphi %s1564_s29, %s2074_s29   ;;  %s1488_s28 = sphi %s1562_s28, %s2073_s28   ;;  %s1484_s27 = sphi %s1560_s27, %s2072_s27   ;;  %s1480_s26 = sphi %s1558_s26, %s2071_s26  }
  0x10   : > { %s43_s10 = sadd.s32 1, %s1496_s30  ;;  %s52_s11 = sadd.s32 1, %s1488_s28 }
  0x11   : > { %p45_p0 = scmp.ge.s32.totalorder %s43_s10, 2  ;;  %p59_p1 = scmp.ne.s32.totalorder %s1488_s28, %s1484_s27 }
  0x12   : > { %p60_p2 = scmp.eq.s32.totalorder %s1500_s8, 0  ;;  %p65_p3 = scmp.ne.s32.totalorder %s1484_s27, %s1480_s26 }
  0x13   : > { %s2077_s10 = smov (%p45_p0, %s43_s10), 0  ;;  %p66_p5 = scmp.eq.s32.totalorder %s1589_s3, 0 }
  0x14   : > { %2059 = sst [smem:[#allocation19_spill]] %s2077_s10  ;;  %p1601_p4 = por %p60_p2, %p59_p1 }
  0x15   : > { %s47_s13 = ssub.s32 %s1496_s30, %s2077_s10  ;;  %p159_p6 = scmp.eq.s32.totalorder %s1589_s3, 1 }
  0x16   : > { %p50_p7 = scmp.eq.s32.totalorder %s47_s13, 0  ;;  %p1609_p8 = por %p66_p5, %p65_p3 }
  0x17   : > { %p1613_p9 = por %p159_p6, %p59_p1  ;;  %p165_p10 = scmp.eq.s32.totalorder %s2054_s9, 1 }
  0x18   : > { %s1620_s16 = scalar_select %p50_p7, %s1488_s28, %s52_s11  }
  0x19   : > { %p1622_p11 = por %p165_p10, %p65_p3  ;;  %p1240_p13 = scmp.lt.s32.totalorder %s1500_s8, 2 }
  0x1a   : > { %s269_s18 = sand.u32 1, %s1488_s28   ;;  %s1212_s20 = sshll.u32 %s1496_s30, 10 }
  0x1b   : > { %s1191_s19 = sshll.u32 %s269_s18, 6  ;;  %s2064_s0 = sld [smem:[#allocation20_spill]] }
  0x1c   : > { %s273_s24 = scalar_lea.vmem [#allocation6], %s1191_s19  ;;  %p1635_p0 = pnand %p1240_p13, %p1601_p4 }
  0x1d   : > { %s281_s25 = sshll.u32 %s273_s24, 4  ;;  %p1194_p1 = scmp.ge.s32.totalorder %s1500_s8, 1  ;;  %s282_s25 = int_to_ptr.vmem [resolvable:$true] %s281_s25 }
  0x1e   : > { %s270_s13 = scalar_lea.sflag [#allocation7], %s269_s18  ;;  %p1308_p2 = pneg %p1635_p0 }
  0x1f   : > { %s1319_s9 = scalar_lea.vmem %s282_s25, 1024  ;;  %s1502_s10 = smov [#allocation6]  }
  0x20   : > { %p1320_p3 = scmp.ne.s32.totalorder %s282_s25, %s1319_s9  ;;  %s1324_s21 = sshll.u32 %s1502_s10, 4  ;;  %s1325_s21 = int_to_ptr.vmem [resolvable:$false] %s1324_s21 }
  0x21   : > { %s280_s23 = scalar_lea.hbm %s2064_s0, %s1212_s20  ;;  %s1326_s19 = scalar_lea.vmem %s1325_s21, 2048 }
  0x22   : > { %p1322_p5 = pnand %p1320_p3, %p1308_p2  ;;  %p1327_p7 = scmp.lt.s32.totalorder %s282_s25, %s1325_s21 }
  0x23   : > { %p1328_p10 = scmp.lt.s32.totalorder %s1326_s19, %s1319_s9 }
  0x24   : > { %p1323_p6 = pneg %p1322_p5 }
  0x25   : > { %p1329_p12 = por %p1328_p10, %p1327_p7 }
  0x27   : > { %p1330_p4 = pnand %p1329_p12, %p1323_p6 }
  0x29   : > { %1333 = shalt.err (!%p1330_p4)
}
  0x2a   : > { %s1503_s12 = smov 128   ;;  %s1504_s18 = smov 8  }
  0x2b   : > { %1226 = dma.hbm_to_vmem [thread:$0]  (!%p1635_p0), %s280_s23, 1024, %s282_s25, %s270_s13, %s1503_s12, %s1503_s12, %s1504_s18  }
  0x2c   : > { %p299_p13 = scmp.lt.s32.totalorder %s1500_s8, 3 }
  0x2e   : > { %p300_p2 = pnand %p1194_p1, %p299_p13 }
  0x2f   : > { %s1648_s10 = sand.u32 (!%p300_p2), 1, %s1484_s27  }
  0x30   : > { %303 = sbr.rel (%p300_p2) target bundleno = 816 (0x330), region = 36  ;;  %s1195_s9 = sshll.u32 (!%p300_p2), %s1648_s10, 6 }
  0x31   : > { %s306_s20 = scalar_lea.sflag (!%p300_p2), [#allocation7], %s1648_s10  ;;  %s1652_s22 = scalar_lea.vmem (!%p300_p2), [#allocation6], %s1195_s9 }
  0x35   : > { %1463 = dma.done.wait (%p1609_p8), %s306_s20, 1024  }
  0x36   : > { %1465 = vsyncadd (%p1609_p8), %s306_s20, 4294966272  ;;  %vm374_vm0 = vcmask 261120   ;;  %v1659_v0 = vld [vmem:[%s1652_s22] sm:$0xff]  ;;  %s2066_s2 = sld [smem:[#allocation22_spill]]  ;;  %v1665_v2 = vld [vmem:[%s1652_s22 + $0x10] sm:$0xff]  ;;  %vm379_vm1 = vcmask 7168   ;;  %v683_v27 = vlaneseq }
  0x37   : > { %v1672_v7 = vld [vmem:[%s1652_s22 + $0x8] sm:$0xff]  ;;  %v1676_v9 = vld [vmem:[%s1652_s22 + $0x18] sm:$0xff]  ;;  %v1681_v12 = vld [vmem:[%s1652_s22 + $0x20] sm:$0xff]  ;;  %v1505_v25 = vmov -1e+30   ;;  %s664_s14 = sld [smem:[#allocation5]] }
  0x38   : > { %v1687_v16 = vld [vmem:[%s1652_s22 + $0x28] sm:$0xff]  ;;  %v1692_v19 = vld [vmem:[%s1652_s22 + $0x30] sm:$0xff]  ;;  %v1697_v22 = vld [vmem:[%s1652_s22 + $0x38] sm:$0xff]  ;;  %380 = vst.msk [vmem:[#allocation2] sm:$0xff] %vm379_vm1, %v1505_v25  ;;  %v684_v30 = vand.u32 127, %v683_v27  ;;  %v1702_v31 = vshrl.u32 %v683_v27, 7 }
  0x39   : > { %vm458_vm2 = vcmask 1041409   ;;  %p363_p8 = scmp.lt.s32.totalorder %s1492_s29, 1  ;;  %vm460_vm3 = vcmask 1042434   ;;  %vm462_vm4 = vcmask 1043459   ;;  %vm464_vm5 = vcmask 1044484   ;;  %s2067_s1 = sld [smem:[#allocation21_spill]] }
  0x3a   : > { %v687_v34 = vsub.s32 %v684_v30, %v1702_v31  ;;  %vm466_vm6 = vcmask 1045509   ;;  %vm468_vm7 = vcmask 1046534   ;;  %vm470_vm8 = vcmask 1047559   ;;  %s1766_s12 = sshll.u32 %s1648_s10, 3  ;;  %s936_s23 = sand.u32 1, %s1589_s3  }
  0x3b   : > { %s364_s25 = scalar_select %p363_p8, %s1492_s29, 1  ;;  %vm727_vm10 = vcmask 64512  }
  0x3c   : > { %v1201_v1 = vld [vmem:[%s2066_s2] ss:$0 sm:$0xff]  ;;  %s1772_s18 = scalar_lea.vmem [#allocation13], %s1766_s12  ;;  %s1786_s9 = scalar_lea.vmem [#allocation12], %s1766_s12 }
  0x3d   : > { %v632_v3 = vmul.f32 %v1201_v1, %v1659_v0  ;;  %v634_v4 = vmul.f32 %v1201_v1, %v1665_v2  ;;  %v633_v8 = vmul.f32 %v1201_v1, %v1672_v7  ;;  %v635_v11 = vmul.f32 %v1201_v1, %v1676_v9  ;;  %s1200_s11 = sshll.u32 %s364_s25, 3  ;;  %s1883_s20 = scalar_lea.vmem [#allocation10], %s1766_s12 }
  0x3e   : > { %v636_v14 = vmul.f32 %v1201_v1, %v1681_v12  ;;  %v637_v17 = vmul.f32 %v1201_v1, %v1687_v16  ;;  %v638_v20 = vmul.f32 %v1201_v1, %v1692_v19  ;;  %v639_v23 = vmul.f32 %v1201_v1, %v1697_v22  ;;  %s1891_s22 = scalar_lea.vmem [#allocation9], %s1766_s12  ;;  %s1912_s24 = sshll.u32 %s1492_s29, 7 }
  0x3f   : > { %v640_v5 = vsel %vm374_vm0, %v632_v3, 0.0  ;;  %v646_v6 = vsel %vm374_vm0, %v634_v4, 0.0  ;;  %v643_v10 = vsel %vm374_vm0, %v633_v8, 0.0  ;;  %v649_v13 = vsel %vm374_vm0, %v635_v11, 0.0  ;;  %s369_s19 = scalar_lea.vmem %s2067_s1, %s1200_s11  ;;  %s1920_s11 = scalar_lea.hbm %s2051_s5, %s1912_s24 }
  0x40   : > { %641 = vadd.xlane.f32.xlu0 %v640_v5  ;;  %647 = vadd.xlane.f32.xlu1 %v646_v6  ;;  %v652_v15 = vsel %vm374_vm0, %v636_v14, 0.0  ;;  %v655_v18 = vsel %vm374_vm0, %v637_v17, 0.0  ;;  %v658_v21 = vsel %vm374_vm0, %v638_v20, 0.0  ;;  %v661_v24 = vsel %vm374_vm0, %v639_v23, 0.0  ;;  %v391_v57 = vld [vmem:[%s369_s19] sm:$0xff]  ;;  %s973_s13 = sshll.u32 %s1883_s20, 4  ;;  %s1931_s21 = scalar_lea.hbm %s2050_s4, %s1912_s24  ;;  %s974_s13 = int_to_ptr.vmem [resolvable:$true] %s973_s13 }
  0x41   : > { %v665_v32 = vstv %s664_s14  ;;  %vm674_vm9 = vcmp.eq.f32.partialorder %v391_v57, 0.0  ;;  %v1506_v3 = vmov 0   ;;  %v1507_v4 = vmov 0.0   ;;  %v1725_v5 = vld [vmem:[#allocation2] sm:$0xff]  ;;  %s1933_s19 = scalar_lea.sflag [#allocation11], %s936_s23  ;;  %s1334_s12 = scalar_lea.vmem %s974_s13, 128 }
  0x42   : > { %1298 = vset.pattern.permute.xlu1 %v1506_v3  ;;  %1299 = vset.pattern.permute.xlu0 %v1506_v3  ;;  %381 = vst.msk [vmem:[#allocation3] sm:$0xff] %vm379_vm1, %v1507_v4  ;;  %382 = vst.msk [vmem:[#allocation4] sm:$0xff] %vm379_vm1, %v1507_v4  ;;  %v558_v17 = vsel %vm374_vm0, %v1672_v7, 0.0  ;;  %p1335_p12 = scmp.ne.s32.totalorder %s974_s13, %s1334_s12  ;;  %s1511_s14 = smov [#allocation10]  }
  0x43   : > { %v559_v23 = vrot.slane %v558_v17, 4  ;;  %378 = vst.msk [vmem:[%s1772_s18] sm:$0xff] %vm374_vm0, %v1507_v4  ;;  %377 = vst.msk [vmem:[%s1786_s9] sm:$0xff] %vm374_vm0, %v1507_v4  ;;  %v490_v4 = vsel %vm374_vm0, %v1665_v2, inf  ;;  %s1338_s25 = sshll.u32 %s1511_s14, 4  ;;  %s1339_s25 = int_to_ptr.vmem [resolvable:$false] %s1338_s25 }
  0x44   : > { %644 = vadd.xlane.f32.xlu0 %v643_v10  ;;  %650 = vadd.xlane.f32.xlu1 %v649_v13  ;;  %p1336_p0 = pnand %p1335_p12, %p1613_p9  ;;  %p1341_p3 = scmp.lt.s32.totalorder %s974_s13, %s1339_s25 }
  0x46   : > { %p1337_p1 = pneg %p1336_p0 }
  0x48   : > { %653 = vadd.xlane.f32.xlu0 %v652_v15  ;;  %656 = vadd.xlane.f32.xlu1 %v655_v18  ;;  %v551_v15 = vsel %vm374_vm0, %v1659_v0, 0.0  ;;  %v767_v18 = vsub.s32 1, %v1702_v31 }
  0x4c   : > { %659 = vadd.xlane.f32.xlu0 %v658_v21  ;;  %662 = vadd.xlane.f32.xlu1 %v661_v24  ;;  %v552_v21 = vrot.slane %v551_v15, 4  ;;  %v1508_v24 = vmov 1.0  }
  0x4d   : > { %v898_v25 = vsel %vm674_vm9, 0.0, %v1508_v24  ;;  %v760_v24 = vsub.s32 0, %v1702_v31 }
  0x4e   : > { %v899_v30 = vsel %vm727_vm10, %v898_v25, 0.0 }
  0xc9   : > { %v642_v26 = vpop.xlane.xlu0 %641  ;;  %v648_v28 = vpop.xlane.xlu1 %647 }
  0xca   : > { %v666_v35 = vadd.f32 %v665_v32, %v642_v26  ;;  %v668_v38 = vadd.f32 %v665_v32, %v648_v28  ;;  %v565_v26 = vsel %vm374_vm0, %v1665_v2, 0.0 }
  0xcc   : > { %v688_v39 = vrot.slane %v666_v35, %v687_v34  ;;  %v696_v43 = vrot.slane %v668_v38, %v687_v34  ;;  %v572_v35 = vsel %vm374_vm0, %v1676_v9, 0.0 }
  0xcd   : > { %v645_v29 = vpop.xlane.xlu0 %644  ;;  %v651_v36 = vpop.xlane.xlu1 %650  ;;  %v573_v38 = vrot.slane %v572_v35, 4 }
  0xce   : > { %v667_v33 = vadd.f32 %v665_v32, %v645_v29  ;;  %v669_v40 = vadd.f32 %v665_v32, %v651_v36  ;;  %v774_v29 = vsub.s32 2, %v1702_v31 }
  0xd0   : > { %v692_v37 = vrot.slane %v667_v33, %v687_v34  ;;  %v700_v46 = vrot.slane %v669_v40, %v687_v34  ;;  %v566_v33 = vrot.slane %v565_v26, 4 }
  0xd1   : > { %v654_v41 = vpop.xlane.xlu0 %653  ;;  %v657_v45 = vpop.xlane.xlu1 %656 }
  0xd2   : > { %v717_v42 = vsel %vm458_vm2, %v692_v37, %v688_v39  ;;  %v670_v44 = vadd.f32 %v665_v32, %v654_v41  ;;  %v671_v48 = vadd.f32 %v665_v32, %v657_v45  ;;  %v781_v37 = vsub.s32 3, %v1702_v31 }
  0xd3   : > { %v718_v47 = vsel %vm460_vm3, %v696_v43, %v717_v42  ;;  %v579_v39 = vsel %vm374_vm0, %v1681_v12, 0.0  ;;  %v567_v41 = vadd.f32 %v566_v33, %v565_v26  ;;  %v802_v33 = vsub.s32 6, %v1702_v31 }
  0xd4   : > { %v704_v50 = vrot.slane %v670_v44, %v687_v34  ;;  %v719_v52 = vsel %vm462_vm4, %v700_v46, %v718_v47  ;;  %v708_v53 = vrot.slane %v671_v48, %v687_v34  ;;  %v788_v44 = vsub.s32 4, %v1702_v31 }
  0xd5   : > { %v660_v49 = vpop.xlane.xlu0 %659  ;;  %v663_v56 = vpop.xlane.xlu1 %662  ;;  %v580_v45 = vrot.slane %v579_v39, 4  ;;  %v586_v46 = vsel %vm374_vm0, %v1687_v16, 0.0  ;;  %v574_v47 = vadd.f32 %v573_v38, %v572_v35 }
  0xd6   : > { %v672_v51 = vadd.f32 %v665_v32, %v660_v49  ;;  %v720_v54 = vsel %vm464_vm5, %v704_v50, %v719_v52  ;;  %v673_v58 = vadd.f32 %v665_v32, %v663_v56  ;;  %v553_v32 = vadd.f32 %v552_v21, %v551_v15 }
  0xd7   : > { %v721_v59 = vsel %vm466_vm6, %v708_v53, %v720_v54  ;;  %v568_v49 = vrot.slane %v567_v41, 2  ;;  %v593_v52 = vsel %vm374_vm0, %v1692_v19, 0.0  ;;  %v795_v54 = vsub.s32 5, %v1702_v31 }
  0xd8   : > { %v712_v55 = vrot.slane %v672_v51, %v687_v34  ;;  %v716_v61 = vrot.slane %v673_v58, %v687_v34  ;;  %v560_v34 = vadd.f32 %v559_v23, %v558_v17  ;;  %v554_v40 = vrot.slane %v553_v32, 2 }
  0xd9   : > { %v587_v51 = vrot.slane %v586_v46, 4  ;;  %v575_v56 = vrot.slane %v574_v47, 2  ;;  %v569_v58 = vadd.f32 %v568_v49, %v567_v41 }
  0xda   : > { %v722_v60 = vsel %vm468_vm7, %v712_v55, %v721_v59  ;;  %v561_v42 = vrot.slane %v560_v34, 2  ;;  %v555_v48 = vadd.f32 %v554_v40, %v553_v32  ;;  %v581_v55 = vadd.f32 %v580_v45, %v579_v39 }
  0xdb   : > { %v723_v62 = vsel %vm470_vm8, %v716_v61, %v722_v60  ;;  %v594_v59 = vrot.slane %v593_v52, 4  ;;  %v600_v60 = vsel %vm374_vm0, %v1697_v22, 0.0 }
  0xdc   : > { %v725_v63 = vsel %vm674_vm9, -1e+30, %v723_v62  ;;  %v562_v50 = vadd.f32 %v561_v42, %v560_v34  ;;  %v556_v57 = vrot.slane %v555_v48, 1  ;;  %v588_v62 = vadd.f32 %v587_v51, %v586_v46  ;;  %v550_v51 = vld [vmem:[%s1786_s9] sm:$0xff] }
  0xdd   : > { %v728_v1 = vsel %vm727_vm10, %v725_v63, -inf }
  0xde   : > { %729 = vmax.xlane.f32.xlu0 %v728_v1  ;;  %v563_v61 = vrot.slane %v562_v50, 1  ;;  %v809_v1 = vsub.s32 7, %v1702_v31  ;;  %v557_v15 = vadd.f32 %v556_v57, %v555_v48  ;;  %v401_v57 = vsel %vm374_vm0, %v1672_v7, -inf }
  0xe0   : > { %v564_v17 = vadd.f32 %v563_v61, %v562_v50  ;;  %v415_v61 = vsel %vm374_vm0, %v1676_v9, -inf }
 0x167   : > { %v730_v6 = vpop.xlane.xlu0 %729 }
 0x168   : > { %v731_v8 = vmax.f32 %v1725_v5, %v730_v6 }
 0x16a   : > { %v732_v10 = vsub.f32 %v1725_v5, %v731_v8  ;;  %896 = vst.msk [vmem:[#allocation2] sm:$0xff] %vm379_vm1, %v731_v8  ;;  %737 = vperm.xlu1 %1298, %v731_v8   ;;  %v582_v5 = vrot.slane %v581_v55, 2  ;;  %v576_v8 = vadd.f32 %v575_v56, %v574_v47 }
 0x16c   : > { %v733_v6 = vmul.f32 1.442695, %v732_v10  ;;  %v583_v23 = vadd.f32 %v582_v5, %v581_v55  ;;  %v577_v25 = vrot.slane %v576_v8, 1  ;;  %v408_v55 = vsel %vm374_vm0, %v1665_v2, -inf }
 0x16e   : > { %v578_v34 = vadd.f32 %v577_v25, %v576_v8 }
 0x1e5   : > { %v738_v11 = vpop.permute.xlu1 %737 }
 0x1e6   : > { %v740_v13 = vsub.f32 %v725_v63, %v738_v11  ;;  %v601_v11 = vrot.slane %v600_v60, 4 }
 0x1e8   : > { %v741_v14 = vmul.f32 1.442695, %v740_v13  ;;  %v570_v13 = vrot.slane %v569_v58, 1  ;;  %v602_v26 = vadd.f32 %v601_v11, %v600_v60  ;;  %v409_v60 = vrot.slane %v408_v55, 4 }
 0x1e9   : > { %v416_v11 = vrot.slane %v415_v61, 4 }
 0x1ea   : > { %1300 = vpow2.f32 %v741_v14  ;;  %v595_v14 = vadd.f32 %v594_v59, %v593_v52  ;;  %v603_v35 = vrot.slane %v602_v26, 2  ;;  %v483_v59 = vsel %vm374_vm0, %v1672_v7, inf }
 0x1eb   : > { %1302 = vpow2.f32 %v733_v6  ;;  %v484_v6 = vrot.slane %v483_v59, 4  ;;  %v417_v25 = vmax.f32 %v415_v61, %v416_v11  ;;  %v436_v61 = vsel %vm374_vm0, %v1692_v19, -inf }
 0x1ec   : > { %v596_v10 = vrot.slane %v595_v14, 2  ;;  %v604_v41 = vadd.f32 %v603_v35, %v602_v26 }
 0x1ee   : > { %v605_v46 = vrot.slane %v604_v41, 1 }
 0x1f7   : > { %v1735_v20 = vpop.eup %1300 }
 0x1f8   : > { %v745_v27 = vsel %vm727_vm10, %v1735_v20, 0.0  ;;  %v768_v28 = vrot.slane %v1735_v20, %v767_v18  ;;  %v775_v36 = vrot.slane %v1735_v20, %v774_v29  ;;  %v782_v43 = vrot.slane %v1735_v20, %v781_v37  ;;  %v1781_v45 = vpop.eup %1302 }
 0x1f9   : > { %746 = vadd.xlane.f32.xlu0 %v745_v27  ;;  %v789_v53 = vrot.slane %v1735_v20, %v788_v44  ;;  %v796_v63 = vrot.slane %v1735_v20, %v795_v54  ;;  %v589_v18 = vrot.slane %v588_v62, 2  ;;  %v810_v21 = vrot.slane %v1735_v20, %v809_v1 }
 0x1fa   : > { %770 = vbcast.lane.b32.xlu1 %v768_v28, 256  ;;  %v571_v27 = vadd.f32 %v570_v13, %v569_v58  ;;  %v615_v29 = vsel %vm458_vm2, %v564_v17, %v557_v15  ;;  %v761_v32 = vrot.slane %v1735_v20, %v760_v24  ;;  %v803_v40 = vrot.slane %v1735_v20, %v802_v33 }
 0x1fb   : > { %v590_v28 = vadd.f32 %v589_v18, %v588_v62  ;;  %v606_v20 = vadd.f32 %v605_v46, %v604_v41  ;;  %v476_v54 = vsel %vm374_vm0, %v1659_v0, inf  ;;  %v491_v62 = vrot.slane %v490_v4, 4 }
 0x1fc   : > { %v616_v37 = vsel %vm460_vm3, %v571_v27, %v615_v29  ;;  %v477_v58 = vrot.slane %v476_v54, 4  ;;  %v497_v1 = vsel %vm374_vm0, %v1676_v9, inf  ;;  %v410_v13 = vmax.f32 %v408_v55, %v409_v60 }
 0x1fd   : > { %900 = vadd.xlane.f32.xlu0 %v899_v30  ;;  %v584_v30 = vrot.slane %v583_v23, 1  ;;  %v591_v38 = vrot.slane %v590_v28, 1  ;;  %v617_v31 = vsel %vm462_vm4, %v578_v34, %v616_v37  ;;  %v492_v17 = vmin.f32 %v490_v4, %v491_v62 }
 0x1fe   : > { %777 = vbcast.lane.b32.xlu1 %v775_v36, 256  ;;  %v597_v36 = vadd.f32 %v596_v10, %v595_v14  ;;  %v478_v8 = vmin.f32 %v476_v54, %v477_v58  ;;  %v498_v14 = vrot.slane %v497_v1, 4  ;;  %v411_v26 = vrot.slane %v410_v13, 2 }
 0x1ff   : > { %v585_v39 = vadd.f32 %v584_v30, %v583_v23  ;;  %v485_v23 = vmin.f32 %v483_v59, %v484_v6  ;;  %v422_v10 = vsel %vm374_vm0, %v1681_v12, -inf  ;;  %v493_v30 = vrot.slane %v492_v17, 2 }
 0x200   : > { %v598_v42 = vrot.slane %v597_v36, 1  ;;  %v479_v24 = vrot.slane %v478_v8, 2  ;;  %v499_v27 = vmin.f32 %v497_v1, %v498_v14  ;;  %v429_v33 = vsel %vm374_vm0, %v1687_v16, -inf }
 0x201   : > { %v618_v44 = vsel %vm464_vm5, %v585_v39, %v617_v31  ;;  %v486_v35 = vrot.slane %v485_v23, 2  ;;  %v423_v37 = vrot.slane %v422_v10, 4  ;;  %v511_v39 = vsel %vm374_vm0, %v1687_v16, inf }
 0x202   : > { %784 = vbcast.lane.b32.xlu1 %v782_v43, 256  ;;  %v592_v43 = vadd.f32 %v591_v38, %v590_v28  ;;  %v599_v47 = vadd.f32 %v598_v42, %v597_v36  ;;  %v504_v28 = vsel %vm374_vm0, %v1681_v12, inf  ;;  %v418_v36 = vrot.slane %v417_v25, 2 }
 0x203   : > { %v505_v38 = vrot.slane %v504_v28, 4  ;;  %v412_v41 = vmax.f32 %v410_v13, %v411_v26  ;;  %v500_v31 = vrot.slane %v499_v27, 2  ;;  %v430_v42 = vrot.slane %v429_v33, 4 }
 0x204   : > { %v619_v48 = vsel %vm466_vm6, %v592_v43, %v618_v44  ;;  %v494_v44 = vmin.f32 %v492_v17, %v493_v30 }
 0x205   : > { %v620_v49 = vsel %vm468_vm7, %v599_v47, %v619_v48  ;;  %v487_v48 = vmin.f32 %v485_v23, %v486_v35  ;;  %v501_v54 = vmin.f32 %v499_v27, %v500_v31  ;;  %v431_v55 = vmax.f32 %v429_v33, %v430_v42 }
 0x206   : > { %791 = vbcast.lane.b32.xlu1 %v789_v53, 256  ;;  %v621_v50 = vsel %vm470_vm8, %v606_v20, %v620_v49  ;;  %v394_v53 = vsel %vm374_vm0, %v1659_v0, -inf  ;;  %v512_v20 = vrot.slane %v511_v39, 4  ;;  %v419_v49 = vmax.f32 %v417_v25, %v418_v36 }
 0x207   : > { %v623_v52 = vadd.f32 %v621_v50, %v550_v51  ;;  %v395_v56 = vrot.slane %v394_v53, 4  ;;  %v424_v50 = vmax.f32 %v422_v10, %v423_v37  ;;  %v506_v51 = vmin.f32 %v504_v28, %v505_v38  ;;  %v743_v10 = vld [vmem:[#allocation3] sm:$0xff] }
 0x208   : > { %v495_v4 = vrot.slane %v494_v44, 1  ;;  %v488_v59 = vrot.slane %v487_v48, 1  ;;  %v513_v60 = vmin.f32 %v511_v39, %v512_v20  ;;  %v420_v62 = vrot.slane %v419_v49, 1 }
 0x209   : > { %624 = vst.msk [vmem:[%s1786_s9] sm:$0xff] %vm374_vm0, %v623_v52  ;;  %v396_v5 = vmax.f32 %v394_v53, %v395_v56  ;;  %v413_v53 = vrot.slane %v412_v41, 1  ;;  %v507_v1 = vrot.slane %v506_v51, 2  ;;  %v502_v11 = vrot.slane %v501_v54, 1 }
 0x20a   : > { %798 = vbcast.lane.b32.xlu1 %v796_v63, 256  ;;  %v402_v63 = vrot.slane %v401_v57, 4  ;;  %v432_v13 = vrot.slane %v431_v55, 2  ;;  %v1828_v17 = vmin.f32 %v494_v44, %v495_v4  ;;  %v489_v28 = vmin.f32 %v487_v48, %v488_v59 }
 0x20b   : > { %v1835_v30 = vmax.f32 %v419_v49, %v420_v62  ;;  %v508_v33 = vmin.f32 %v506_v51, %v507_v1  ;;  %v525_v36 = vsel %vm374_vm0, %v1697_v22, inf  ;;  %v443_v42 = vsel %vm374_vm0, %v1697_v22, -inf }
 0x20c   : > { %v403_v18 = vmax.f32 %v401_v57, %v402_v63  ;;  %v425_v63 = vrot.slane %v424_v50, 2  ;;  %v433_v35 = vmax.f32 %v431_v55, %v432_v13  ;;  %v444_v55 = vrot.slane %v443_v42, 4 }
 0x20e   : > { %812 = vbcast.lane.b32.xlu1 %v810_v21, 256  ;;  %v397_v21 = vrot.slane %v396_v5, 2  ;;  %v434_v20 = vrot.slane %v433_v35, 1 }
 0x210   : > { %v398_v34 = vmax.f32 %v396_v5, %v397_v21  ;;  %v518_v5 = vsel %vm374_vm0, %v1692_v19, inf  ;;  %v437_v21 = vrot.slane %v436_v61, 4  ;;  %v1854_v1 = vmax.f32 %v433_v35, %v434_v20 }
 0x211   : > { %v519_v25 = vrot.slane %v518_v5, 4 }
 0x212   : > { %v399_v47 = vrot.slane %v398_v34, 1  ;;  %v438_v37 = vmax.f32 %v436_v61, %v437_v21 }
 0x213   : > { %763 = vbcast.lane.b32.xlu0 %v761_v32, 256  ;;  %v404_v32 = vrot.slane %v403_v18, 2  ;;  %v520_v39 = vmin.f32 %v518_v5, %v519_v25 }
 0x214   : > { %v1820_v58 = vmax.f32 %v398_v34, %v399_v47  ;;  %v1837_v34 = vmin.f32 %v501_v54, %v502_v11  ;;  %v509_v47 = vrot.slane %v508_v33, 1 }
 0x215   : > { %v405_v46 = vmax.f32 %v403_v18, %v404_v32  ;;  %v426_v32 = vmax.f32 %v424_v50, %v425_v63  ;;  %v521_v54 = vrot.slane %v520_v39, 2 }
 0x216   : > { %v510_v61 = vmin.f32 %v508_v33, %v509_v47 }
 0x217   : > { %805 = vbcast.lane.b32.xlu0 %v803_v40, 256  ;;  %v480_v40 = vmin.f32 %v478_v8, %v479_v24  ;;  %v406_v57 = vrot.slane %v405_v46, 1  ;;  %v1826_v8 = vmax.f32 %v412_v41, %v413_v53  ;;  %v514_v24 = vrot.slane %v513_v60, 2 }
 0x218   : > { %v439_v53 = vrot.slane %v438_v37, 2 }
 0x219   : > { %v481_v52 = vrot.slane %v480_v40, 1  ;;  %v1830_v18 = vmax.f32 %v405_v46, %v406_v57  ;;  %v515_v38 = vmin.f32 %v513_v60, %v514_v24  ;;  %v427_v46 = vrot.slane %v426_v32, 1 }
 0x21a   : > { %v440_v21 = vmax.f32 %v438_v37, %v439_v53 }
 0x21b   : > { %754 = vperm.xlu0 %1299, %v1781_v45   ;;  %v482_v6 = vmin.f32 %v480_v40, %v481_v52  ;;  %v516_v52 = vrot.slane %v515_v38, 1  ;;  %v428_v60 = vmax.f32 %v426_v32, %v427_v46  ;;  %v459_v33 = vsel %vm458_vm2, %v1830_v18, %v1820_v58 }
 0x21c   : > { %v461_v58 = vsel %vm460_vm3, %v1826_v8, %v459_v33 }
 0x21d   : > { %v540_v5 = vsel %vm458_vm2, %v489_v28, %v482_v6  ;;  %v463_v8 = vsel %vm462_vm4, %v1835_v30, %v461_v58 }
 0x21e   : > { %v541_v6 = vsel %vm460_vm3, %v1828_v17, %v540_v5 }
 0x26c   : > { %v771_v15 = vpop.permute.xlu1 %770 }
 0x26d   : > { %v815_v23 = vmul.f32 %v771_v15, %v1672_v7 }
 0x270   : > { %v778_v29 = vpop.permute.xlu1 %777 }
 0x271   : > { %v816_v26 = vmul.f32 %v778_v29, %v1665_v2  ;;  %v829_v2 = vsel %vm374_vm0, %v815_v23, 0.0  ;;  %v744_v29 = vmul.f32 %v1781_v45, %v743_v10  ;;  %v897_v45 = vld [vmem:[#allocation4] sm:$0xff]  ;;  %v445_v23 = vmax.f32 %v443_v42, %v444_v55 }
 0x272   : > { %v830_v48 = vrot.slane %v829_v2, 4 }
 0x273   : > { %v836_v40 = vsel %vm374_vm0, %v816_v26, 0.0  ;;  %v522_v26 = vmin.f32 %v520_v39, %v521_v54 }
 0x274   : > { %v785_v43 = vpop.permute.xlu1 %784  ;;  %v837_v49 = vrot.slane %v836_v40, 4  ;;  %v831_v62 = vadd.f32 %v830_v48, %v829_v2  ;;  %v441_v2 = vrot.slane %v440_v21, 1 }
 0x275   : > { %v817_v27 = vmul.f32 %v785_v43, %v1676_v9  ;;  %v526_v43 = vrot.slane %v525_v36, 4 }
 0x276   : > { %v838_v11 = vadd.f32 %v837_v49, %v836_v40  ;;  %v832_v28 = vrot.slane %v831_v62, 2  ;;  %v542_v40 = vsel %vm462_vm4, %v1837_v34, %v541_v6  ;;  %v442_v53 = vmax.f32 %v440_v21, %v441_v2 }
 0x277   : > { %v843_v41 = vsel %vm374_vm0, %v817_v27, 0.0 }
 0x278   : > { %v792_v56 = vpop.permute.xlu1 %791  ;;  %v844_v50 = vrot.slane %v843_v41, 4 }
 0x279   : > { %v818_v7 = vmul.f32 %v792_v56, %v1681_v12 }
 0x27a   : > { %v845_v13 = vadd.f32 %v844_v50, %v843_v41  ;;  %v833_v41 = vadd.f32 %v832_v28, %v831_v62  ;;  %v1510_v28 = vmov -inf  }
 0x27b   : > { %375 = vst.msk [vmem:[%s1891_s22] sm:$0xff] %vm374_vm0, %v1510_v28 }
 0x27c   : > { %v799_v14 = vpop.permute.xlu1 %798  ;;  %v834_v34 = vrot.slane %v833_v41, 1 }
 0x27d   : > { %v819_v9 = vmul.f32 %v799_v14, %v1687_v16  ;;  %v850_v16 = vsel %vm374_vm0, %v818_v7, 0.0  ;;  %v517_v14 = vmin.f32 %v515_v38, %v516_v52  ;;  %v839_v7 = vrot.slane %v838_v11, 2 }
 0x27e   : > { %v851_v4 = vrot.slane %v850_v16, 4  ;;  %v835_v5 = vadd.f32 %v834_v34, %v833_v41 }
 0x27f   : > { %v857_v51 = vsel %vm374_vm0, %v819_v9, 0.0  ;;  %v446_v9 = vrot.slane %v445_v23, 2 }
 0x280   : > { %v813_v15 = vpop.permute.xlu1 %812  ;;  %v858_v63 = vrot.slane %v857_v51, 4  ;;  %v852_v10 = vadd.f32 %v851_v4, %v850_v16 }
 0x281   : > { %v821_v12 = vmul.f32 %v813_v15, %v1697_v22  ;;  %v527_v22 = vmin.f32 %v525_v36, %v526_v43  ;;  %v846_v15 = vrot.slane %v845_v13, 2  ;;  %v523_v43 = vrot.slane %v522_v26, 1 }
 0x282   : > { %v747_v31 = vpop.xlane.xlu0 %746  ;;  %v859_v35 = vadd.f32 %v858_v63, %v857_v51  ;;  %v853_v17 = vrot.slane %v852_v10, 2  ;;  %v447_v47 = vmax.f32 %v445_v23, %v446_v9  ;;  %v751_v9 = vld [vmem:[%s1772_s18] sm:$0xff] }
 0x283   : > { %v748_v44 = vadd.f32 %v747_v31, %v744_v29  ;;  %v871_v57 = vsel %vm374_vm0, %v821_v12, 0.0  ;;  %v528_v27 = vrot.slane %v527_v22, 2  ;;  %v840_v12 = vadd.f32 %v839_v7, %v838_v11 }
 0x284   : > { %v872_v24 = vrot.slane %v871_v57, 4  ;;  %v860_v31 = vrot.slane %v859_v35, 2  ;;  %v854_v49 = vadd.f32 %v853_v17, %v852_v10  ;;  %v524_v54 = vmin.f32 %v522_v26, %v523_v43 }
 0x285   : > { %750 = vst.msk [vmem:[#allocation3] sm:$0xff] %vm379_vm1, %v748_v44  ;;  %v529_v39 = vmin.f32 %v527_v22, %v528_v27  ;;  %v847_v44 = vadd.f32 %v846_v15, %v845_v13  ;;  %v841_v55 = vrot.slane %v840_v12, 1  ;;  %v465_v22 = vsel %vm464_vm5, %v428_v60, %v463_v8 }
 0x286   : > { %v901_v56 = vpop.xlane.xlu0 %900  ;;  %v861_v50 = vadd.f32 %v860_v31, %v859_v35  ;;  %v448_v62 = vrot.slane %v447_v47, 1  ;;  %v467_v21 = vsel %vm466_vm6, %v1854_v1, %v465_v22 }
 0x287   : > { %v902_v59 = vadd.f32 %v901_v56, %v897_v45  ;;  %v530_v20 = vrot.slane %v529_v39, 1  ;;  %v848_v56 = vrot.slane %v847_v44, 1 }
 0x288   : > { %v862_v11 = vrot.slane %v861_v50, 1  ;;  %v449_v35 = vmax.f32 %v447_v47, %v448_v62  ;;  %v392_v47 = vld [vmem:[%s1891_s22] sm:$0xff] }
 0x289   : > { %903 = vst.msk [vmem:[#allocation4] sm:$0xff] %vm379_vm1, %v902_v59  ;;  %v531_v63 = vmin.f32 %v529_v39, %v530_v20 }
 0x28a   : > { %v764_v25 = vpop.permute.xlu0 %763  ;;  %v863_v7 = vadd.f32 %v862_v11, %v861_v50 }
 0x28b   : > { %v814_v32 = vmul.f32 %v764_v25, %v1659_v0  ;;  %v873_v0 = vadd.f32 %v872_v24, %v871_v57  ;;  %v842_v24 = vadd.f32 %v841_v55, %v840_v12  ;;  %v849_v25 = vadd.f32 %v848_v56, %v847_v44 }
 0x28c   : > { %v1864_v36 = vld [vmem:[#allocation3] sm:$0xff] }
 0x28d   : > { %v822_v37 = vsel %vm374_vm0, %v814_v32, 0.0  ;;  %1304 = vrcp.f32 %v1864_v36  ;;  %v874_v48 = vrot.slane %v873_v0, 2 }
 0x28e   : > { %v823_v29 = vrot.slane %v822_v37, 4  ;;  %v806_v38 = vpop.permute.xlu0 %805 }
 0x28f   : > { %v820_v18 = vmul.f32 %v806_v38, %v1692_v19  ;;  %v543_v19 = vsel %vm464_vm5, %v510_v61, %v542_v40  ;;  %v875_v4 = vadd.f32 %v874_v48, %v873_v0  ;;  %v855_v61 = vrot.slane %v854_v49, 1  ;;  %v907_v48 = vld [vmem:[%s1786_s9] sm:$0xff] }
 0x290   : > { %v824_v42 = vadd.f32 %v823_v29, %v822_v37  ;;  %v544_v30 = vsel %vm466_vm6, %v517_v14, %v543_v19  ;;  %v1509_v14 = vmov inf   ;;  %v922_v0 = vld [vmem:[#allocation4] sm:$0xff]  ;;  %v469_v29 = vsel %vm468_vm7, %v442_v53, %v467_v21 }
 0x291   : > { %v864_v46 = vsel %vm374_vm0, %v820_v18, 0.0  ;;  %v876_v26 = vrot.slane %v875_v4, 1  ;;  %376 = vst.msk [vmem:[%s1883_s20] sm:$0xff] %vm374_vm0, %v1509_v14  ;;  %v545_v32 = vsel %vm468_vm7, %v524_v54, %v544_v30  ;;  %v856_v33 = vadd.f32 %v855_v61, %v854_v49 }
 0x292   : > { %v825_v16 = vrot.slane %v824_v42, 2  ;;  %v865_v45 = vrot.slane %v864_v46, 4  ;;  %v546_v39 = vsel %vm470_vm8, %v531_v63, %v545_v32  ;;  %vm923_vm11 = vcmp.gt.f32.partialorder %v922_v0, 0.0 }
 0x293   : > { %v877_v58 = vadd.f32 %v876_v26, %v875_v4  ;;  %v471_v31 = vsel %vm470_vm8, %v449_v35, %v469_v29  ;;  %v924_v44 = vsel %vm923_vm11, 1, %v1506_v3 }
 0x294   : > { %v826_v51 = vadd.f32 %v825_v16, %v824_v42  ;;  %v866_v52 = vadd.f32 %v865_v45, %v864_v46  ;;  %v473_v16 = vmax.f32 %v392_v47, %v471_v31  ;;  %v908_v45 = vmul.f32 0.125, %v907_v48 }
 0x296   : > { %v827_v57 = vrot.slane %v826_v51, 1  ;;  %v867_v59 = vrot.slane %v866_v52, 2  ;;  %v755_v2 = vpop.permute.xlu0 %754  ;;  %474 = vst.msk [vmem:[%s1891_s22] sm:$0xff] %vm374_vm0, %v473_v16  ;;  %909 = vst.msk [vmem:[%s1786_s9] sm:$0xff] %vm374_vm0, %v908_v45 }
 0x297   : > { %v757_v40 = vmul.f32 %v755_v2, %v751_v9 }
 0x298   : > { %v828_v13 = vadd.f32 %v827_v57, %v826_v51  ;;  %v868_v23 = vadd.f32 %v867_v59, %v866_v52  ;;  %v475_v12 = vld [vmem:[%s1883_s20] sm:$0xff] }
 0x299   : > { %v548_v46 = vmin.f32 %v475_v12, %v546_v39 }
 0x29a   : > { %v1305_v60 = vpop.eup %1304  ;;  %v886_v27 = vsel %vm458_vm2, %v835_v5, %v828_v13  ;;  %v869_v10 = vrot.slane %v868_v23, 1 }
 0x29b   : > { %v887_v6 = vsel %vm460_vm3, %v842_v24, %v886_v27  ;;  %v912_v1 = vmul.f32 %v1305_v60, %v1864_v36  ;;  %549 = vst.msk [vmem:[%s1883_s20] sm:$0xff] %vm374_vm0, %v548_v46  ;;  %s1340_s20 = scalar_lea.vmem %s1339_s25, 256 }
 0x29c   : > { %v870_v15 = vadd.f32 %v869_v10, %v868_v23  ;;  %v888_v37 = vsel %vm462_vm4, %v849_v25, %v887_v6  ;;  %p1342_p5 = scmp.lt.s32.totalorder %s1340_s20, %s1334_s12 }
 0x29d   : > { %v889_v38 = vsel %vm464_vm5, %v856_v33, %v888_v37  ;;  %v913_v36 = vsub.f32 2.0, %v912_v1 }
 0x29e   : > { %v890_v17 = vsel %vm466_vm6, %v863_v7, %v889_v38  ;;  %p1343_p6 = por %p1342_p5, %p1341_p3 }
 0x29f   : > { %v891_v18 = vsel %vm468_vm7, %v870_v15, %v890_v17  ;;  %v914_v41 = vmul.f32 %v1305_v60, %v913_v36 }
 0x2a0   : > { %v892_v42 = vsel %vm470_vm8, %v877_v58, %v891_v18  ;;  %p1344_p7 = pnand %p1343_p6, %p1337_p1 }
 0x2a1   : > { %v894_v43 = vadd.f32 %v892_v42, %v757_v40  ;;  %918 = vperm.xlu1 %1298, %v914_v41  }
 0x2a3   : > { %895 = vst.msk [vmem:[%s1772_s18] sm:$0xff] %vm374_vm0, %v894_v43 }
 0x2a5   : > { %926 = vperm.xlu1 %1298, %v924_v44  }
 0x2a6   : > { %1347 = shalt.err (!%p1344_p7)
}
 0x2a7   : > { %s1348_s23 = scalar_lea.hbm %s1920_s11, 128  ;;  %s1352_s14 = scalar_lea.hbm %s2051_s5, 256 }
 0x2a8   : > { %p1349_p10 = scmp.ne.s32.totalorder %s1920_s11, %s1348_s23  ;;  %p1353_p2 = scmp.lt.s32.totalorder %s1920_s11, %s2051_s5 }
 0x2a9   : > { %p1354_p8 = scmp.lt.s32.totalorder %s1352_s14, %s1348_s23 }
 0x2aa   : > { %p1350_p4 = pnand %p1349_p10, %p1613_p9 }
 0x2ab   : > { %p1355_p12 = por %p1354_p8, %p1353_p2 }
 0x2ac   : > { %p1351_p13 = pneg %p1350_p4 }
 0x2ae   : > { %p1356_p0 = pnand %p1355_p12, %p1351_p13 }
 0x2b0   : > { %1359 = shalt.err (!%p1356_p0)
}
 0x2b1   : > { %1216 = dma.vmem_to_hbm [thread:$0]  (%p1613_p9), %s974_s13, 128, %s1920_s11, %s1933_s19  }
 0x2b2   : > { %s960_s12 = sshll.u32 %s1891_s22, 4  ;;  %s1957_s0 = scalar_lea.hbm %s2052_s6, %s1912_s24  ;;  %s961_s12 = int_to_ptr.vmem [resolvable:$true] %s960_s12 }
 0x2b3   : > { %s986_s1 = sshll.u32 %s1786_s9, 4  ;;  %s932_s23 = scalar_lea.sflag [#allocation8], %s1648_s10  ;;  %s987_s1 = int_to_ptr.vmem [resolvable:$true] %s986_s1 }
 0x2b4   : > { %s1360_s29 = scalar_lea.vmem %s961_s12, 128  ;;  %s1512_s3 = smov [#allocation9]  }
 0x2b5   : > { %p1361_p1 = scmp.ne.s32.totalorder %s961_s12, %s1360_s29  ;;  %s1364_s14 = sshll.u32 %s1512_s3, 4  ;;  %s1365_s14 = int_to_ptr.vmem [resolvable:$false] %s1364_s14 }
 0x2b6   : > { %s1366_s2 = scalar_lea.vmem %s1365_s14, 256  ;;  %p1367_p6 = scmp.lt.s32.totalorder %s961_s12, %s1365_s14 }
 0x2b7   : > { %p1362_p3 = pnand %p1361_p1, %p1613_p9  ;;  %p1368_p7 = scmp.lt.s32.totalorder %s1366_s2, %s1360_s29 }
 0x2b9   : > { %p1363_p5 = pneg %p1362_p3  ;;  %p1369_p10 = por %p1368_p7, %p1367_p6 }
 0x2bb   : > { %p1370_p4 = pnand %p1369_p10, %p1363_p5 }
 0x2bd   : > { %1373 = shalt.err (!%p1370_p4)
}
 0x2be   : > { %s1374_s9 = scalar_lea.hbm %s1931_s21, 128  ;;  %s1378_s13 = scalar_lea.hbm %s2050_s4, 256 }
 0x2bf   : > { %p1375_p13 = scmp.ne.s32.totalorder %s1931_s21, %s1374_s9  ;;  %p1379_p12 = scmp.lt.s32.totalorder %s1931_s21, %s2050_s4 }
 0x2c0   : > { %p1380_p0 = scmp.lt.s32.totalorder %s1378_s13, %s1374_s9 }
 0x2c1   : > { %p1376_p2 = pnand %p1375_p13, %p1613_p9 }
 0x2c2   : > { %p1381_p1 = por %p1380_p0, %p1379_p12 }
 0x2c3   : > { %p1377_p8 = pneg %p1376_p2 }
 0x2c5   : > { %p1382_p3 = pnand %p1381_p1, %p1377_p8 }
 0x2c7   : > { %1385 = shalt.err (!%p1382_p3)
}
 0x2c8   : > { %1215 = dma.vmem_to_hbm [thread:$0]  (%p1613_p9), %s961_s12, 128, %s1931_s21, %s932_s23  }
 0x2c9   : > { %s1386_s2 = scalar_lea.vmem %s987_s1, 128  ;;  %s1513_s29 = smov [#allocation12]  }
 0x2ca   : > { %p1387_p5 = scmp.ne.s32.totalorder %s987_s1, %s1386_s2  ;;  %s1390_s3 = sshll.u32 %s1513_s29, 4  ;;  %s1391_s3 = int_to_ptr.vmem [resolvable:$false] %s1390_s3 }
 0x2cb   : > { %s1392_s14 = scalar_lea.vmem %s1391_s3, 256  ;;  %p1393_p10 = scmp.lt.s32.totalorder %s987_s1, %s1391_s3 }
 0x2cc   : > { %p1388_p6 = pnand %p1387_p5, %p1613_p9  ;;  %p1394_p4 = scmp.lt.s32.totalorder %s1392_s14, %s1386_s2 }
 0x2ce   : > { %p1389_p7 = pneg %p1388_p6  ;;  %p1395_p13 = por %p1394_p4, %p1393_p10 }
 0x2d0   : > { %p1396_p2 = pnand %p1395_p13, %p1389_p7 }
 0x2d2   : > { %1399 = shalt.err (!%p1396_p2)
}
 0x2d3   : > { %s1400_s21 = scalar_lea.hbm %s1957_s0, 128  ;;  %s1404_s9 = scalar_lea.hbm %s2052_s6, 256 }
 0x2d4   : > { %p1401_p8 = scmp.ne.s32.totalorder %s1957_s0, %s1400_s21  ;;  %p1405_p1 = scmp.lt.s32.totalorder %s1957_s0, %s2052_s6 }
 0x2d5   : > { %p1406_p3 = scmp.lt.s32.totalorder %s1404_s9, %s1400_s21 }
 0x2d6   : > { %p1402_p12 = pnand %p1401_p8, %p1613_p9 }
 0x2d7   : > { %p1407_p5 = por %p1406_p3, %p1405_p1 }
 0x2d8   : > { %p1403_p0 = pneg %p1402_p12 }
 0x2da   : > { %p1408_p6 = pnand %p1407_p5, %p1403_p0 }
 0x2dc   : > { %1411 = shalt.err (!%p1408_p6)
}
 0x2dd   : > { %1217 = dma.vmem_to_hbm [thread:$0]  (%p1613_p9), %s987_s1, 128, %s1957_s0, %s1933_s19   ;;  %v915_v20 = vld [vmem:[%s1772_s18] sm:$0xff] }
 0x2de   : > { %s999_s13 = sshll.u32 %s1772_s18, 4  ;;  %s2000_s2 = scalar_lea.hbm %s2053_s7, %s1912_s24  ;;  %s1000_s13 = int_to_ptr.vmem [resolvable:$true] %s999_s13 }
 0x2df   : > { %s947_s29 = scalar_lea.sflag [#allocation14], %s1648_s10  ;;  %s1412_s3 = scalar_lea.vmem %s1000_s13, 128 }
 0x2e0   : > { %p1413_p7 = scmp.ne.s32.totalorder %s1000_s13, %s1412_s3  ;;  %s1514_s19 = smov [#allocation13]  }
 0x2e1   : > { %s1416_s0 = sshll.u32 %s1514_s19, 4  ;;  %s1417_s0 = int_to_ptr.vmem [resolvable:$false] %s1416_s0 }
 0x2e2   : > { %p1414_p10 = pnand %p1413_p7, %p1613_p9  ;;  %s1418_s1 = scalar_lea.vmem %s1417_s0, 256 }
 0x2e3   : > { %p1419_p13 = scmp.lt.s32.totalorder %s1000_s13, %s1417_s0  ;;  %p1420_p2 = scmp.lt.s32.totalorder %s1418_s1, %s1412_s3 }
 0x2e4   : > { %p1415_p4 = pneg %p1414_p10 }
 0x2e5   : > { %p1421_p8 = por %p1420_p2, %p1419_p13 }
 0x2e7   : > { %p1422_p12 = pnand %p1421_p8, %p1415_p4 }
 0x31c   : > { %v919_v3 = vpop.permute.xlu1 %918 }
 0x31d   : > { %v921_v8 = vmul.f32 %v919_v3, %v915_v20 }
 0x320   : > { %v927_v19 = vpop.permute.xlu1 %926 }
 0x321   : > { %vm928_vm12 = vcmp.eq.s32.totalorder %v927_v19, 1 }
 0x322   : > { %v929_v49 = vsel %vm928_vm12, %v921_v8, nan }
 0x323   : > { %930 = vst.msk [vmem:[%s1772_s18] sm:$0xff] %vm374_vm0, %v929_v49 }
 0x324   : > { %1425 = shalt.err (!%p1422_p12)
}
 0x325   : > { %s1426_s18 = scalar_lea.hbm %s2000_s2, 128  ;;  %s1430_s14 = scalar_lea.hbm %s2053_s7, 256 }
 0x326   : > { %p1427_p0 = scmp.ne.s32.totalorder %s2000_s2, %s1426_s18  ;;  %p1431_p5 = scmp.lt.s32.totalorder %s2000_s2, %s2053_s7 }
 0x327   : > { %p1432_p6 = scmp.lt.s32.totalorder %s1430_s14, %s1426_s18 }
 0x328   : > { %p1428_p1 = pnand %p1427_p0, %p1613_p9 }
 0x329   : > { %p1433_p7 = por %p1432_p6, %p1431_p5 }
 0x32a   : > { %p1429_p3 = pneg %p1428_p1 }
 0x32c   : > { %p1434_p10 = pnand %p1433_p7, %p1429_p3 }
 0x32e   : > { %1437 = shalt.err (!%p1434_p10)
}
 0x32f   : > { %1218 = dma.vmem_to_hbm [thread:$0]  (%p1613_p9), %s1000_s13, 128, %s2000_s2, %s947_s29  }
 0x330 PF: > { %s1011_s23 = sand.u32 1, %s1480_s26   ;;  %p2068_p4 = scmp.ge.s32.totalorder %s1500_s8, 2 }
 0x331   : > { %s1012_s9 = scalar_lea.sflag [#allocation8], %s1011_s23 }
 0x332   : > { %p1228_p13 = pnand %p2068_p4, %p1622_p11 }
 0x334   : > { %p1229_p2 = pneg %p1228_p13 }
 0x336   : > { %1467 = dma.done.wait (%p1229_p2), %s1012_s9, 128  }
 0x337   : > { %1469 = vsyncadd (%p1229_p2), %s1012_s9, 4294967168  ;;  %s2069_s22 = sadd.s32 4294967294, %s1500_s8  }
 0x338   : > { %s1020_s11 = sand.u32 1, %s2069_s22  }
 0x339   : > { %s1021_s25 = scalar_lea.sflag [#allocation11], %s1020_s11 }
 0x33a   : > { %1471 = dma.done.wait (%p1229_p2), %s1021_s25, 256  }
 0x33b   : > { %1473 = vsyncadd (%p1229_p2), %s1021_s25, 4294967040  ;;  %s1039_s15 = scalar_lea.sflag [#allocation14], %s1011_s23 }
 0x33c   : > { %1475 = dma.done.wait (%p1229_p2), %s1039_s15, 128  }
 0x33d   : > { %1477 = vsyncadd (%p1229_p2), %s1039_s15, 4294967168  ;;  %s31_s8 = sadd.s32 1, %s1500_s8   ;;  %s2070_s17 = sld [smem:[#allocation19_spill]] }
 0x33e   : > { %p28_p9 = scmp.ge.s32.totalorder %s31_s8, 4   ;;  %s2071_s26 = smov %s1484_s27 }
 0x33f   : > { %s2072_s27 = smov %s1488_s28  ;;  %s2073_s28 = smov %s1620_s16 }
 0x340   : > { %s2074_s29 = smov %s1496_s30  ;;  %30 = sbr.rel (!%p28_p9) target bundleno = 15 (0xf), region = 141 }
 0x343   : > { %s2075_s30 = smov %s2070_s17 }
 0x345   :  { %1044 = vsyncpa [#allocation7], 1 }
 0x346   :  { %1046 = vsyncpa [#allocation7 + $0x1], 1 }
 0x347   :  { %1047 = vsyncpa [#allocation8], 1 }
 0x348   :  { %1049 = vsyncpa [#allocation8 + $0x1], 1 }
 0x349   :  { %1050 = vsyncpa [#allocation11], 1 }
 0x34a   :  { %1052 = vsyncpa [#allocation11 + $0x1], 1 }
 0x34b   :  { %1053 = vsyncpa [#allocation14], 1 }
 0x34c   :  { %1055 = vsyncpa [#allocation14 + $0x1], 1 }

</bundles_post_ra>
